<compile_context>
chip_gen: v6e
topology: v6e:2x2x1
jax: 0.10.0
libtpu: 0.0.40
codegen_flags: <defaults>
</compile_context>

<pallas_src>
import jax
import jax.numpy as jnp
from jax import lax
from jax.experimental import pallas as pl
from jax.experimental.pallas import tpu as pltpu


def _round_up(n, m):
    return ((n + m - 1) // m) * m


# Keep the per-step VMEM footprint (double-buffered x tile + layer intermediates
# + output double buffer) comfortably inside v5e's 16 MiB scoped-VMEM default.
_MAX_TB = 16384


def _mlp_kernel(x_ref, w1_ref, b1_ref, w2_ref, b2_ref,
                w3_ref, b3_ref, w4_ref, b4_ref, o_ref):
    # x_ref: (TB, F) f32, straight from HBM. Cast to bf16 in-kernel and contract
    # over x's minor F axis so the result is lane-dense (out, TB) — no wrapper
    # transpose and no masked partial stores on the output.
    x_bf = x_ref[...].astype(jnp.bfloat16)

    # layer 1 + relu:  W1 (15, F) . x^T  ->  (15, TB), f32 accumulation.
    h = lax.dot_general(w1_ref[...], x_bf,
                        dimension_numbers=(((1,), (1,)), ((), ())),
                        preferred_element_type=jnp.float32)
    h = jnp.maximum(h + b1_ref[...], 0.0)
    # layer 2 + relu
    h = jnp.dot(w2_ref[...], h.astype(w2_ref.dtype),
                preferred_element_type=jnp.float32)
    h = jnp.maximum(h + b2_ref[...], 0.0)
    # layer 3 + relu
    h = jnp.dot(w3_ref[...], h.astype(w3_ref.dtype),
                preferred_element_type=jnp.float32)
    h = jnp.maximum(h + b3_ref[...], 0.0)
    # layer 4 (no activation)
    h = jnp.dot(w4_ref[...], h.astype(w4_ref.dtype),
                preferred_element_type=jnp.float32)
    o_ref[...] = (h + b4_ref[...]).astype(o_ref.dtype)


def proplay_prediction_forward(x, params, *, block_b=8192):
    """x: (B, F) float32.  params: PyTorch-native layout, w_i (out, in), b_i (out, 1)."""
    B, F = x.shape
    out_size = params["w4"].shape[0]

    # Batch tile: lanes of the output -> multiple of 128. Large tiles amortize
    # the fixed per-grid-step cost; cap for v5e scoped VMEM.
    tb = min(_round_up(block_b, 128), _round_up(B, 128), _MAX_TB)
    # Keep >= 2 grid steps for non-trivial batches so v7x's two TensorCores
    # both get work (the batch axis is marked "parallel").
    if B > 256 and pl.cdiv(B, tb) < 2:
        tb = _round_up(pl.cdiv(B, 2), 128)
    grid = (pl.cdiv(B, tb),)   # partial last block: OOB reads confined to
                               # discarded lanes, OOB output writes masked.

    weights = tuple(params[f"w{i}"].astype(jnp.bfloat16) for i in range(1, 5))
    biases = tuple(params[f"b{i}"].astype(jnp.float32) for i in range(1, 5))

    def _resident(a):
        # Full-extent block + constant index_map -> fetched once, stays
        # resident in VMEM across all batch tiles.
        return pl.BlockSpec(a.shape, lambda i: (0, 0))

    in_specs = [pl.BlockSpec((tb, F), lambda i: (i, 0))]   # streamed x tiles
    args = [x]
    for w, b in zip(weights, biases):
        in_specs += [_resident(w), _resident(b)]
        args += [w, b]

    yt = pl.pallas_call(
        _mlp_kernel,
        out_shape=jax.ShapeDtypeStruct((out_size, B), jnp.float32),
        grid=grid,
        in_specs=in_specs,
        out_specs=pl.BlockSpec((out_size, tb), lambda i: (0, i)),
        compiler_params=pltpu.CompilerParams(
            dimension_semantics=("parallel",)),
    )(*args)

    # Back to the PyTorch-facing (B, out) layout (tiny wrapper transpose).
    return yt.T


def init_params(key, input_size, output_size=2):
    """Deterministic synthetic init mirroring nn.Linear: w_i (out, in), b_i (out, 1)."""
    sizes = [(15, input_size), (10, 15), (5, 10), (output_size, 5)]
    params = {}
    for i, (fan_out, fan_in) in enumerate(sizes, start=1):
        key, kw, kb = jax.random.split(key, 3)
        bound = 1.0 / jnp.sqrt(float(fan_in))
        params[f"w{i}"] = jax.random.uniform(
            kw, (fan_out, fan_in), jnp.float32, -bound, bound)
        params[f"b{i}"] = jax.random.uniform(
            kb, (fan_out, 1), jnp.float32, -bound, bound)
    return params


def _reference_f32(x, p):
    """Pure f32 reference matching the PyTorch module semantics."""
    h = jnp.maximum(x @ p["w1"].T + p["b1"][:, 0], 0.0)
    h = jnp.maximum(h @ p["w2"].T + p["b2"][:, 0], 0.0)
    h = jnp.maximum(h @ p["w3"].T + p["b3"][:, 0], 0.0)
    return h @ p["w4"].T + p["b4"][:, 0]


def _reference_kernel_precision(x, p):
    """Reference that mimics the kernel's bf16 MXU inputs / f32 accumulation."""
    def bf(a):
        return a.astype(jnp.bfloat16).astype(jnp.float32)
    h = bf(x)
    for i in range(1, 4):
        h = jnp.maximum(h @ bf(p[f"w{i}"]).T + p[f"b{i}"][:, 0], 0.0)
        h = bf(h)
    return h @ bf(p["w4"]).T + p["b4"][:, 0]


if __name__ == "__main__":
    key = jax.random.PRNGKey(0)
    key, kx = jax.random.split(key)
    batch, input_size, output_size = 8, 32, 2
    x = jax.random.normal(kx, (batch, input_size), jnp.float32)
    params = init_params(key, input_size, output_size)

    out = jax.block_until_ready(proplay_prediction_forward(x, params))
    assert out.shape == (batch, output_size)

    ref_exact = _reference_kernel_precision(x, params)
    assert jnp.allclose(out, ref_exact, atol=1e-3, rtol=1e-3), \
        float(jnp.max(jnp.abs(out - ref_exact)))

    ref_f32 = _reference_f32(x, params)
    assert jnp.allclose(out, ref_f32, atol=5e-2, rtol=5e-2), \
        float(jnp.max(jnp.abs(out - ref_f32)))

    print("KERNEL_OK")
</pallas_src>

<mosaic_0001>
module attributes {stable_mosaic.version = 11 : i64} {
  func.func @_mlp_kernel(%arg0: i32, %arg1: memref<128x32xf32, #tpu.memory_space<vmem>>, %arg2: memref<15x32xbf16, #tpu.memory_space<vmem>>, %arg3: memref<15x1xf32, #tpu.memory_space<vmem>>, %arg4: memref<10x15xbf16, #tpu.memory_space<vmem>>, %arg5: memref<10x1xf32, #tpu.memory_space<vmem>>, %arg6: memref<5x10xbf16, #tpu.memory_space<vmem>>, %arg7: memref<5x1xf32, #tpu.memory_space<vmem>>, %arg8: memref<2x5xbf16, #tpu.memory_space<vmem>>, %arg9: memref<2x1xf32, #tpu.memory_space<vmem>>, %arg10: memref<2x128xf32, #tpu.memory_space<vmem>>) attributes {dimension_semantics = [#tpu.dimension_semantics<parallel>], iteration_bounds = array<i64: 1>, scalar_prefetch = 0 : i64, scratch_operands = 0 : i64, tpu.core_type = #tpu.core_type<tc>, window_params = [{transform_indices = @transform_0, window_bounds = array<i64: 128, 32>}, {pipeline_mode = #tpu.pipeline_mode<synchronous>, transform_indices = @transform_1, window_bounds = array<i64: 15, 32>}, {pipeline_mode = #tpu.pipeline_mode<synchronous>, transform_indices = @transform_2, window_bounds = array<i64: 15, 1>}, {pipeline_mode = #tpu.pipeline_mode<synchronous>, transform_indices = @transform_3, window_bounds = array<i64: 10, 15>}, {pipeline_mode = #tpu.pipeline_mode<synchronous>, transform_indices = @transform_4, window_bounds = array<i64: 10, 1>}, {pipeline_mode = #tpu.pipeline_mode<synchronous>, transform_indices = @transform_5, window_bounds = array<i64: 5, 10>}, {pipeline_mode = #tpu.pipeline_mode<synchronous>, transform_indices = @transform_6, window_bounds = array<i64: 5, 1>}, {pipeline_mode = #tpu.pipeline_mode<synchronous>, transform_indices = @transform_7, window_bounds = array<i64: 2, 5>}, {pipeline_mode = #tpu.pipeline_mode<synchronous>, transform_indices = @transform_8, window_bounds = array<i64: 2, 1>}, {transform_indices = @transform_9, window_bounds = array<i64: 2, 128>}]} {
    %c0 = arith.constant 0 : index
    %c0_0 = arith.constant 0 : index
    %0 = vector.load %arg1[%c0, %c0_0] : memref<128x32xf32, #tpu.memory_space<vmem>>, vector<128x32xf32>
    %1 = arith.truncf %0 : vector<128x32xf32> to vector<128x32xbf16>
    %c0_1 = arith.constant 0 : index
    %c0_2 = arith.constant 0 : index
    %2 = vector.load %arg2[%c0_1, %c0_2] : memref<15x32xbf16, #tpu.memory_space<vmem>>, vector<15x32xbf16>
    %cst = arith.constant dense<0.000000e+00> : vector<15x128xf32>
    %3 = tpu.matmul %2, %1, %cst {dimension_numbers = #tpu.dot_dimension_numbers<[1], [1], [0], [0], [0, 0, 1, 0], [], []>} : vector<15x32xbf16>, vector<128x32xbf16>, vector<15x128xf32> -> vector<15x128xf32>
    %c0_3 = arith.constant 0 : index
    %c0_4 = arith.constant 0 : index
    %4 = vector.load %arg3[%c0_3, %c0_4] : memref<15x1xf32, #tpu.memory_space<vmem>>, vector<15x1xf32>
    %5 = vector.broadcast %4 : vector<15x1xf32> to vector<15x128xf32>
    %6 = arith.addf %3, %5 : vector<15x128xf32>
    %cst_5 = arith.constant 0.000000e+00 : f32
    %7 = vector.broadcast %cst_5 : f32 to vector<15x128xf32>
    %8 = arith.maximumf %6, %7 : vector<15x128xf32>
    %c0_6 = arith.constant 0 : index
    %c0_7 = arith.constant 0 : index
    %9 = vector.load %arg4[%c0_6, %c0_7] : memref<10x15xbf16, #tpu.memory_space<vmem>>, vector<10x15xbf16>
    %10 = arith.truncf %8 : vector<15x128xf32> to vector<15x128xbf16>
    %cst_8 = arith.constant dense<0.000000e+00> : vector<10x128xf32>
    %11 = tpu.matmul %9, %10, %cst_8 {dimension_numbers = #tpu.dot_dimension_numbers<[1], [0], [0], [1], [0, 0, 1, 1], [], []>} : vector<10x15xbf16>, vector<15x128xbf16>, vector<10x128xf32> -> vector<10x128xf32>
    %c0_9 = arith.constant 0 : index
    %c0_10 = arith.constant 0 : index
    %12 = vector.load %arg5[%c0_9, %c0_10] : memref<10x1xf32, #tpu.memory_space<vmem>>, vector<10x1xf32>
    %13 = vector.broadcast %12 : vector<10x1xf32> to vector<10x128xf32>
    %14 = arith.addf %11, %13 : vector<10x128xf32>
    %cst_11 = arith.constant 0.000000e+00 : f32
    %15 = vector.broadcast %cst_11 : f32 to vector<10x128xf32>
    %16 = arith.maximumf %14, %15 : vector<10x128xf32>
    %c0_12 = arith.constant 0 : index
    %c0_13 = arith.constant 0 : index
    %17 = vector.load %arg6[%c0_12, %c0_13] : memref<5x10xbf16, #tpu.memory_space<vmem>>, vector<5x10xbf16>
    %18 = arith.truncf %16 : vector<10x128xf32> to vector<10x128xbf16>
    %cst_14 = arith.constant dense<0.000000e+00> : vector<5x128xf32>
    %19 = tpu.matmul %17, %18, %cst_14 {dimension_numbers = #tpu.dot_dimension_numbers<[1], [0], [0], [1], [0, 0, 1, 1], [], []>} : vector<5x10xbf16>, vector<10x128xbf16>, vector<5x128xf32> -> vector<5x128xf32>
    %c0_15 = arith.constant 0 : index
    %c0_16 = arith.constant 0 : index
    %20 = vector.load %arg7[%c0_15, %c0_16] : memref<5x1xf32, #tpu.memory_space<vmem>>, vector<5x1xf32>
    %21 = vector.broadcast %20 : vector<5x1xf32> to vector<5x128xf32>
    %22 = arith.addf %19, %21 : vector<5x128xf32>
    %cst_17 = arith.constant 0.000000e+00 : f32
    %23 = vector.broadcast %cst_17 : f32 to vector<5x128xf32>
    %24 = arith.maximumf %22, %23 : vector<5x128xf32>
    %c0_18 = arith.constant 0 : index
    %c0_19 = arith.constant 0 : index
    %25 = vector.load %arg8[%c0_18, %c0_19] : memref<2x5xbf16, #tpu.memory_space<vmem>>, vector<2x5xbf16>
    %26 = arith.truncf %24 : vector<5x128xf32> to vector<5x128xbf16>
    %cst_20 = arith.constant dense<0.000000e+00> : vector<2x128xf32>
    %27 = tpu.matmul %25, %26, %cst_20 {dimension_numbers = #tpu.dot_dimension_numbers<[1], [0], [0], [1], [0, 0, 1, 1], [], []>} : vector<2x5xbf16>, vector<5x128xbf16>, vector<2x128xf32> -> vector<2x128xf32>
    %c0_21 = arith.constant 0 : index
    %c0_22 = arith.constant 0 : index
    %28 = vector.load %arg9[%c0_21, %c0_22] : memref<2x1xf32, #tpu.memory_space<vmem>>, vector<2x1xf32>
    %29 = vector.broadcast %28 : vector<2x1xf32> to vector<2x128xf32>
    %30 = arith.addf %27, %29 : vector<2x128xf32>
    %c0_23 = arith.constant 0 : index
    %c0_24 = arith.constant 0 : index
    %31 = vector.load %arg10[%c0_23, %c0_24] : memref<2x128xf32, #tpu.memory_space<vmem>>, vector<2x128xf32>
    tpu.vector_store %arg10[%c0_23, %c0_24], %30 {strides = array<i32>} : memref<2x128xf32, #tpu.memory_space<vmem>>, vector<2x128xf32>,
    return
  }
  func.func @transform_0(%arg0: i32) -> (i32, i32) {
    %c0_i32 = arith.constant 0 : i32
    %c0_i32_0 = arith.constant 0 : i32
    return %arg0, %c0_i32 : i32, i32
  }
  func.func @transform_1(%arg0: i32) -> (i32, i32) {
    %c0_i32 = arith.constant 0 : i32
    %c0_i32_0 = arith.constant 0 : i32
    %c0_i32_1 = arith.constant 0 : i32
    return %c0_i32, %c0_i32_0 : i32, i32
  }
  func.func @transform_2(%arg0: i32) -> (i32, i32) {
    %c0_i32 = arith.constant 0 : i32
    %c0_i32_0 = arith.constant 0 : i32
    %c0_i32_1 = arith.constant 0 : i32
    return %c0_i32, %c0_i32_0 : i32, i32
  }
  func.func @transform_3(%arg0: i32) -> (i32, i32) {
    %c0_i32 = arith.constant 0 : i32
    %c0_i32_0 = arith.constant 0 : i32
    %c0_i32_1 = arith.constant 0 : i32
    return %c0_i32, %c0_i32_0 : i32, i32
  }
  func.func @transform_4(%arg0: i32) -> (i32, i32) {
    %c0_i32 = arith.constant 0 : i32
    %c0_i32_0 = arith.constant 0 : i32
    %c0_i32_1 = arith.constant 0 : i32
    return %c0_i32, %c0_i32_0 : i32, i32
  }
  func.func @transform_5(%arg0: i32) -> (i32, i32) {
    %c0_i32 = arith.constant 0 : i32
    %c0_i32_0 = arith.constant 0 : i32
    %c0_i32_1 = arith.constant 0 : i32
    return %c0_i32, %c0_i32_0 : i32, i32
  }
  func.func @transform_6(%arg0: i32) -> (i32, i32) {
    %c0_i32 = arith.constant 0 : i32
    %c0_i32_0 = arith.constant 0 : i32
    %c0_i32_1 = arith.constant 0 : i32
    return %c0_i32, %c0_i32_0 : i32, i32
  }
  func.func @transform_7(%arg0: i32) -> (i32, i32) {
    %c0_i32 = arith.constant 0 : i32
    %c0_i32_0 = arith.constant 0 : i32
    %c0_i32_1 = arith.constant 0 : i32
    return %c0_i32, %c0_i32_0 : i32, i32
  }
  func.func @transform_8(%arg0: i32) -> (i32, i32) {
    %c0_i32 = arith.constant 0 : i32
    %c0_i32_0 = arith.constant 0 : i32
    %c0_i32_1 = arith.constant 0 : i32
    return %c0_i32, %c0_i32_0 : i32, i32
  }
  func.func @transform_9(%arg0: i32) -> (i32, i32) {
    %c0_i32 = arith.constant 0 : i32
    %c0_i32_0 = arith.constant 0 : i32
    return %c0_i32, %arg0 : i32, i32
  }
}

</mosaic_0001>

<bundles_post_ra>
// kernel: tpu_custom_call.1
= control target key start
LH: loop header
LB: loop body
LE: loop exit
PB: predicated region body
PF: predicated region fallthrough
CT: control target
= control target key end

     0   :  { %vm77_vm0 = vcmask 261120   ;;  %v443_v2 = vmov 0.0   ;;  %vm444_vm1 = vmmov 0   ;;  %v445_v6 = vmov 0   ;;  %s607_s0 = inlined_call_operand.vmem [shape: f32[8,32], index: 0, kind: input, shape index: {}]   ;;  %s608_s1 = inlined_call_operand.vmem [shape: bf16[15,32], index: 1, kind: input, shape index: {}]   ;;  %s609_s2 = inlined_call_operand.vmem [shape: f32[15,1], index: 2, kind: input, shape index: {}]   ;;  %s610_s3 = inlined_call_operand.vmem [shape: bf16[10,15], index: 3, kind: input, shape index: {}]   ;;  %s611_s4 = inlined_call_operand.vmem [shape: f32[10,1], index: 4, kind: input, shape index: {}]   ;;  %s612_s5 = inlined_call_operand.vmem [shape: bf16[5,10], index: 5, kind: input, shape index: {}]   ;;  %s613_s6 = inlined_call_operand.vmem [shape: f32[5,1], index: 6, kind: input, shape index: {}]   ;;  %s614_s7 = inlined_call_operand.vmem [shape: bf16[2,5], index: 7, kind: input, shape index: {}]   ;;  %s615_s8 = inlined_call_operand.vmem [shape: f32[2,1], index: 8, kind: input, shape index: {}]   ;;  %s616_s9 = inlined_call_operand.hbm [shape: f32[2,8], index: 9, kind: output, shape index: {}]  }
   0x1   :  { %v48_v0 = vld [vmem:[%s607_s0 + $0x70] sm:$0xff]  ;;  %v49_v1 = vld [vmem:[%s607_s0 + $0x78] sm:$0xff]  ;;  %374 = vmatprep.subr.bf16.mxu0 %v443_v2  ;;  %390 = vmatprep.mubr.msk.bf16.mxu0 %vm444_vm1, %v443_v2  ;;  %v46_v4 = vld [vmem:[%s607_s0 + $0x60] sm:$0xff] }
   0x2   :  { %v57_v3 = vpack.c.bf16 %v49_v1, %v48_v0  ;;  %v47_v5 = vld [vmem:[%s607_s0 + $0x68] sm:$0xff]  ;;  %417 = vset.pattern.permute.xlu0 %v445_v6  ;;  %394 = vmatprep.subr.bf16.mxu1 %v443_v2  ;;  %v60_v9 = vld [vmem:[%s609_s2] sm:$0xff] }
   0x3   :  { %396 = vmatprep.mubr.msk.bf16.mxu1 %vm444_vm1, %v443_v2  ;;  %418 = vset.pattern.permute.xlu1 %v445_v6  ;;  %v56_v8 = vpack.c.bf16 %v47_v5, %v46_v4  ;;  %v61_v10 = vld [vmem:[%s609_s2 + $0x8] sm:$0x7f] }
   0x4   :  { %v103_v7 = vsel %vm77_vm0, %v57_v3, 0  ;;  %64 = vperm.xlu0 %417, %v60_v9  }
   0x5   :  { %375 = vmatpush3.bf16.xpose.msra.mxu0 %v103_v7 }
   0x6   :  { %376 = vmatprep.subr.bf16.mxu0 %v443_v2 }
   0x7   :  { %14 = vsyncpa [#allocation3], 0  ;;  %v100_v11 = vsel %vm77_vm0, %v56_v8, 0  ;;  %v44_v12 = vld [vmem:[%s607_s0 + $0x50] sm:$0xff]  ;;  %v45_v13 = vld [vmem:[%s607_s0 + $0x58] sm:$0xff]  ;;  %vm172_vm2 = vcmask 1046528  }
   0x8   :  { %69 = vperm.xlu0 %417, %v61_v10   ;;  %v224_v14 = vld [vmem:[%s613_s6] sm:$0x1f]  ;;  %v55_v15 = vpack.c.bf16 %v45_v13, %v44_v12  ;;  %v43_v18 = vld [vmem:[%s607_s0 + $0x48] sm:$0xff]  ;;  %v40_v21 = vld [vmem:[%s607_s0 + $0x30] sm:$0xff]  ;;  %vm173_vm3 = vcmask 1047552   ;;  %v446_v48 = vmov 65535  }
   0x9   :  { %v42_v17 = vld [vmem:[%s607_s0 + $0x40] sm:$0xff]  ;;  %v41_v22 = vld [vmem:[%s607_s0 + $0x38] sm:$0xff]  ;;  %v39_v26 = vld [vmem:[%s607_s0 + $0x28] sm:$0xff]  ;;  %v174_v49 = vsel %vm172_vm2, 4294967295, %v446_v48  ;;  %vm168_vm4 = vcmask 121856   ;;  %vm234_vm5 = vcmask 1044480  }
   0xa   :  { %v97_v16 = vsel %vm77_vm0, %v55_v15, 0  ;;  %v54_v19 = vpack.c.bf16 %v43_v18, %v42_v17  ;;  %v53_v23 = vpack.c.bf16 %v41_v22, %v40_v21  ;;  %v38_v25 = vld [vmem:[%s607_s0 + $0x20] sm:$0xff]  ;;  %v36_v29 = vld [vmem:[%s607_s0 + $0x10] sm:$0xff]  ;;  %v37_v30 = vld [vmem:[%s607_s0 + $0x18] sm:$0xff]  ;;  %v175_v53 = vsel %vm173_vm3, %v174_v49, 0  ;;  %s447_s30 = smov [#allocation2]  }
   0xb   :  { %v52_v27 = vpack.c.bf16 %v39_v26, %v38_v25  ;;  %v51_v31 = vpack.c.bf16 %v37_v30, %v36_v29  ;;  %v34_v33 = vld [vmem:[%s607_s0] sm:$0xff]  ;;  %v35_v34 = vld [vmem:[%s607_s0 + $0x8] sm:$0xff]  ;;  %vm230_vm6 = vcmask 80896   ;;  %vm291_vm7 = vcmask 1041408   ;;  %s345_s10 = sshll.u32 %s447_s30, 4  ;;  %s346_s10 = int_to_ptr.vmem [resolvable:$true] %s345_s10 }
   0xc   :  { %227 = vperm.xlu0 %417, %v224_v14   ;;  %v94_v20 = vsel %vm77_vm0, %v54_v19, 0  ;;  %v91_v24 = vsel %vm77_vm0, %v53_v23, 0  ;;  %v50_v35 = vpack.c.bf16 %v35_v34, %v34_v33  ;;  %v419_v37 = vld [vmem:[%s608_s1] sm:$0xff]   ;;  %v152_v39 = vld [vmem:[%s611_s4 + $0x8] sm:$0x3]  ;;  %vm292_vm8 = vcmask 1042432   ;;  %p426_p1 = scmp.lt.s32.totalorder %s346_s10, %s346_s10 }
   0xd   :  { %377 = vmatpush3.bf16.xpose.msra.mxu0 %v100_v11  ;;  %v88_v28 = vsel %vm77_vm0, %v52_v27, 0  ;;  %v85_v32 = vsel %vm77_vm0, %v51_v31, 0  ;;  %v151_v38 = vld [vmem:[%s611_s4] sm:$0xff]  ;;  %v293_v10 = vsel %vm291_vm7, 4294967295, %v446_v48  ;;  %vm287_vm9 = vcmask 39936   ;;  %s421_s11 = scalar_lea.vmem %s346_s10, 32 }
   0xe   :  { %378 = vmatprep.subr.bf16.mxu0 %v443_v2  ;;  %v82_v36 = vsel %vm77_vm0, %v50_v35, 0  ;;  %155 = vperm.xlu1 %418, %v151_v38   ;;  %v281_v40 = vld [vmem:[%s615_s8] sm:$0x3]  ;;  %v294_v13 = vsel %vm292_vm8, %v293_v10, 0  ;;  %p422_p0 = scmp.ne.s32.totalorder %s346_s10, %s421_s11  ;;  %p427_p2 = scmp.lt.s32.totalorder %s421_s11, %s421_s11 }
   0xf   :  { %v420_v56 = vld [vmem:[%s610_s3] sm:$0x1f]  }
  0x10   :  { %v222_v6 = vld [vmem:[%s612_s5] sm:$0x7]  ;;  %p428_p3 = por %p427_p2, %p426_p1 }
  0x11   :  { %v279_v18 = vld [vmem:[%s614_s7] sm:$0x1] }
  0x12   :  { %160 = vperm.xlu1 %418, %v152_v39   ;;  %p429_p4 = pnand %p428_p3, %p422_p0 }
  0x15   :  { %379 = vmatpush3.bf16.xpose.msra.mxu0 %v97_v16 }
  0x16   :  { %380 = vmatprep.subr.bf16.mxu0 %v443_v2  ;;  %284 = vperm.xlu1 %418, %v281_v40  }
  0x1d   :  { %381 = vmatpush3.bf16.xpose.msra.mxu0 %v94_v20 }
  0x1e   :  { %382 = vmatprep.subr.bf16.mxu0 %v443_v2 }
  0x25   :  { %383 = vmatpush3.bf16.xpose.msra.mxu0 %v91_v24 }
  0x26   :  { %384 = vmatprep.subr.bf16.mxu0 %v443_v2 }
  0x2d   :  { %385 = vmatpush3.bf16.xpose.msra.mxu0 %v88_v28 }
  0x2e   :  { %386 = vmatprep.subr.bf16.mxu0 %v443_v2 }
  0x35   :  { %387 = vmatpush3.bf16.xpose.msra.mxu0 %v85_v32 }
  0x36   :  { %388 = vmatprep.subr.bf16.mxu0 %v443_v2 }
  0x3d   :  { %389 = vmatpush3.bf16.xpose.msra.mxu0 %v82_v36 }
  0x44   :  { %391 = vmatmul.mubr.msk.bf16.vlgmr.msra.gmra.mxu0 %vm77_vm0, %v419_v37 }
  0x7f   :  { %v65_v41 = vpop.permute.xlu0 %64 }
  0x83   :  { %v70_v45 = vpop.permute.xlu0 %69 }
  0x87   :  { %v228_v7 = vpop.permute.xlu0 %227 }
  0x89   :  { %v156_v57 = vpop.permute.xlu1 %155 }
  0x8d   :  { %v161_v61 = vpop.permute.xlu1 %160 }
 0x104   :  { %v139_v42 = vpop.f32.mrf.mxu0 }
 0x105   :  { %v140_v44 = vadd.f32 %v139_v42, %v65_v41 }
 0x106   :  { %v392_v43 = vpop.f32.mrf.mxu0 }
 0x107   :  { %v146_v51 = vmax.f32 %v140_v44, 0.0 }
 0x108   :  { %v142_v46 = vpop.f32.mrf.mxu0 }
 0x109   :  { %v143_v47 = vadd.f32 %v142_v46, %v70_v45 }
 0x10a   :  { %v393_v50 = vpop.f32.mrf.mxu0 }
 0x10b   :  { %v147_v52 = vmax.f32 %v143_v47, 0.0 }
 0x10d   :  { %v150_v54 = vpack.c.bf16 %v147_v52, %v146_v51 }
 0x10f   :  { %v177_v55 = vand.u32 %v175_v53, %v150_v54 }
 0x111   :  { %395 = vmatpush3.bf16.msra.mxu1 %v177_v55 }
 0x112   :  { %400 = vmatprep.subr.bf16.mxu1 %v443_v2 }
 0x114   :  { %397 = vmatmul.mubr.msk.bf16.vlgmr.msra.gmra.mxu1 %vm168_vm4, %v420_v56 }
 0x115   :  { %402 = vmatprep.mubr.msk.bf16.mxu1 %vm444_vm1, %v443_v2 }
 0x1d4   :  { %v213_v58 = vpop.f32.mrf.mxu1 }
 0x1d5   :  { %v214_v60 = vadd.f32 %v213_v58, %v156_v57 }
 0x1d6   :  { %v398_v59 = vpop.f32.mrf.mxu1 }
 0x1d7   :  { %v220_v1 = vmax.f32 %v214_v60, 0.0 }
 0x1d8   :  { %v216_v62 = vpop.f32.mrf.mxu1 }
 0x1d9   :  { %v217_v63 = vadd.f32 %v216_v62, %v161_v61 }
 0x1da   :  { %v399_v0 = vpop.f32.mrf.mxu1 }
 0x1db   :  { %v221_v3 = vmax.f32 %v217_v63, 0.0 }
 0x1dd   :  { %v223_v4 = vpack.c.bf16 %v221_v3, %v220_v1 }
 0x1df   :  { %v236_v5 = vsel %vm234_vm5, %v223_v4, 0 }
 0x1e0   :  { %401 = vmatpush3.bf16.msra.mxu1 %v236_v5 }
 0x1e1   :  { %406 = vmatprep.subr.bf16.mxu1 %v443_v2 }
 0x1e3   :  { %403 = vmatmul.mubr.msk.bf16.vlgmr.msra.gmra.mxu1 %vm230_vm6, %v222_v6 }
 0x1e4   :  { %408 = vmatprep.mubr.msk.bf16.mxu1 %vm444_vm1, %v443_v2  ;;  %v285_v2 = vpop.permute.xlu1 %284 }
 0x2a3   :  { %v272_v8 = vpop.f32.mrf.mxu1 }
 0x2a4   :  { %v273_v9 = vadd.f32 %v272_v8, %v228_v7 }
 0x2a5   :  { %v404_v11 = vpop.f32.mrf.mxu1 }
 0x2a6   :  { %v278_v12 = vmax.f32 %v273_v9, 0.0 }
 0x2a7   :  { %v275_v14 = vpop.f32.mrf.mxu1 }
 0x2a8   :  { %v280_v15 = vpack.c.bf16 %v278_v12, %v278_v12 }
 0x2a9   :  { %v405_v16 = vpop.f32.mrf.mxu1 }
 0x2aa   :  { %v296_v17 = vand.u32 %v294_v13, %v280_v15 }
 0x2ac   :  { %407 = vmatpush3.bf16.msra.mxu1 %v296_v17 }
 0x2af   :  { %409 = vmatmul.mubr.msk.bf16.vlgmr.msra.gmra.mxu1 %vm287_vm9, %v279_v18 }
 0x36f   :  { %v332_v19 = vpop.f32.mrf.mxu1 }
 0x370   :  { %v333_v20 = vadd.f32 %v332_v19, %v285_v2 }
 0x371   :  { %v410_v21 = vpop.f32.mrf.mxu1 }
 0x372   :  { %338 = vst [vmem:[#allocation2] sm:$0x3] %v333_v20 }
 0x373   :  { %v335_v22 = vpop.f32.mrf.mxu1 }
 0x374   :  { %432 = shalt.err (!%p429_p4)
}
 0x375   :  { %348 = dma.vmem_to_hbm [thread:$0]  %s346_s10, 32, %s616_s9, [#allocation3]   ;;  %v411_v23 = vpop.f32.mrf.mxu1 }
 0x376   :  { %441 = dma.done.wait [#allocation3], 32  }
 0x377   :  { %442 = vsyncadd [#allocation3], 4294967264 }
 0x378   :  { %352 = vsyncpa [#allocation3], 1 }

</bundles_post_ra>
